<compile_context>
chip_gen: v7x
topology: tpu7x:2x2x1
jax: 0.10.0
libtpu: 0.0.40
codegen_flags: <defaults>
</compile_context>

<pallas_src>
import functools

import jax
import jax.numpy as jnp
import numpy as np
from jax import lax
from jax.experimental import pallas as pl
from jax.experimental.pallas import tpu as pltpu

LANE = 128
IGNORE_LABEL = 99.0


def _round_up(a, b):
    return (a + b - 1) // b * b


def _sublane_multiple(*dtypes):
    # Minimum second-minor block granularity per streamed dtype.
    table = {1: 32, 2: 16, 4: 8, 8: 8}
    return max(table.get(jnp.dtype(d).itemsize, 8) for d in dtypes)


def _chip_defaults():
    """Returns (tile_rows for an f32+f32 stream, n_split) per TPU generation."""
    try:
        kind = jax.devices()[0].device_kind.lower()
    except Exception:
        kind = ""
    if "v7" in kind:
        return 8192, 2      # 4 MiB f32 blocks (16 MiB double-buffered), 2 TCs
    if "v5e" in kind or "v5 lite" in kind or "v5lite" in kind:
        return 2048, 1      # stay well under the 16 MiB scoped-VMEM default
    return 4096, 1          # v6e / v4 / unknown


def _dice_partial_kernel(x_ref, t_ref, inter_ref, psum_ref, tsum_ref, *,
                         rows_total, kt, tile_rows, chunk_rows,
                         whole_block, need_masked_branch):
    s = pl.program_id(0)   # "parallel" split (one per TensorCore on v7x)
    k = pl.program_id(1)   # "arbitrary" streaming/reduction axis

    @pl.when(k == 0)
    def _():
        inter_ref[...] = jnp.zeros_like(inter_ref)
        psum_ref[...] = jnp.zeros_like(psum_ref)
        tsum_ref[...] = jnp.zeros_like(tsum_ref)

    if whole_block:
        # Small input: one block that exactly covers the (rows, 128) array.
        x = x_ref[...].astype(jnp.float32)
        t = t_ref[...].astype(jnp.float32)
        valid = t != IGNORE_LABEL
        p = jax.nn.sigmoid(x)
        pm = jnp.where(valid, p, 0.0)
        tm = jnp.where(valid, t, 0.0)
        inter_ref[0, :1, :] += jnp.sum(pm * tm, axis=0, keepdims=True)
        psum_ref[0, :1, :] += jnp.sum(pm, axis=0, keepdims=True)
        tsum_ref[0, :1, :] += jnp.sum(tm, axis=0, keepdims=True)
        return

    blk = s * kt + k
    # Row-granularity index: rows_total = n // 128 always fits int32 for any
    # tensor that fits in HBM, so no overflow even for multi-billion elements.
    row0 = blk * tile_rows
    n_chunks = tile_rows // chunk_rows
    g = chunk_rows // 8
    zeros = jnp.zeros((8, LANE), jnp.float32)

    def make_body(masked):
        def body(c, carry):
            inter, psum, tsum = carry
            r = pl.multiple_of(c * chunk_rows, chunk_rows)
            x = x_ref[pl.ds(r, chunk_rows), :].astype(jnp.float32)
            t = t_ref[pl.ds(r, chunk_rows), :].astype(jnp.float32)
            valid = t != IGNORE_LABEL
            if masked:
                # Only the (single) partial block pays for the iota mask.
                ridx = (row0 + r) + lax.broadcasted_iota(
                    jnp.int32, (chunk_rows, LANE), 0)
                valid = jnp.logical_and(valid, ridx < rows_total)
            p = jax.nn.sigmoid(x)            # exp rides the EUP
            pm = jnp.where(valid, p, 0.0)    # where() also squashes garbage
            tm = jnp.where(valid, t, 0.0)    # read from the block overhang
            # 8-vreg sub-chunk -> (8,128) running accumulators: everything
            # stays in vregs, no full-block temporaries / spills.
            inter = inter + jnp.sum((pm * tm).reshape(g, 8, LANE), axis=0)
            psum = psum + jnp.sum(pm.reshape(g, 8, LANE), axis=0)
            tsum = tsum + jnp.sum(tm.reshape(g, 8, LANE), axis=0)
            return inter, psum, tsum
        return body

    def accumulate(inter, psum, tsum):
        inter_ref[...] += inter[None]
        psum_ref[...] += psum[None]
        tsum_ref[...] += tsum[None]

    if not need_masked_branch:
        # Every block is fully in range and the grid is exact: one fast path.
        inter, psum, tsum = lax.fori_loop(
            0, n_chunks, make_body(False), (zeros, zeros, zeros))
        accumulate(inter, psum, tsum)
        return

    @pl.when(row0 + tile_rows <= rows_total)
    def _():   # fully-in-range block: no index mask at all
        inter, psum, tsum = lax.fori_loop(
            0, n_chunks, make_body(False), (zeros, zeros, zeros))
        accumulate(inter, psum, tsum)

    @pl.when(jnp.logical_and(row0 + tile_rows > rows_total, row0 < rows_total))
    def _():   # partial last block: masked, and only over the live chunks
        live = (rows_total - row0 + chunk_rows - 1) // chunk_rows
        inter, psum, tsum = lax.fori_loop(
            0, live, make_body(True), (zeros, zeros, zeros))
        accumulate(inter, psum, tsum)
    # Fully-phantom blocks (row0 >= rows_total) skip compute entirely.


def dice_loss(inputs, targets, smooth=1.0, tile_rows=None, n_split=None,
              chunk_rows=64, vmem_limit_bytes=None):
    """Pallas DiceLoss forward. Returns a scalar float32."""
    x = inputs.reshape(-1)
    t = targets.reshape(-1)
    n = int(x.shape[0])

    rows = n // LANE
    n_prefix = rows * LANE

    # <128-element ragged tail (and whole tiny tensors) handled in plain JAX;
    # no full-array pad / copy for the streamed prefix.
    if n_prefix < n:
        xt = x[n_prefix:].astype(jnp.float32)
        tt = t[n_prefix:].astype(jnp.float32)
        vt = tt != IGNORE_LABEL
        pt = jnp.where(vt, jax.nn.sigmoid(xt), 0.0)
        tt = jnp.where(vt, tt, 0.0)
        tail = (jnp.sum(pt * tt), jnp.sum(pt), jnp.sum(tt))
    else:
        tail = (jnp.float32(0.0), jnp.float32(0.0), jnp.float32(0.0))

    if rows == 0:
        inter, psum, tsum = tail
    else:
        gran = _sublane_multiple(x.dtype, t.dtype)
        chunk_rows = _round_up(max(8, chunk_rows), gran)

        if tile_rows is None or n_split is None:
            d_tile, d_split = _chip_defaults()
            if tile_rows is None:
                # Keep per-step streamed bytes ~constant vs the f32+f32 tuning.
                stream_bytes = (jnp.dtype(x.dtype).itemsize
                                + jnp.dtype(t.dtype).itemsize)
                tile_rows = d_tile * max(1, 8 // max(1, stream_bytes))
            if n_split is None:
                n_split = d_split

        whole_block = rows <= chunk_rows
        if whole_block:
            tile_rows = rows            # block == full array dims (always legal)
            total_blocks, n_split, kt = 1, 1, 1
        else:
            tile_rows = max(chunk_rows,
                            (min(int(tile_rows), rows) // chunk_rows) * chunk_rows)
            total_blocks = pl.cdiv(rows, tile_rows)
            n_split = max(1, min(int(n_split), total_blocks))
            kt = pl.cdiv(total_blocks, n_split)

        need_masked_branch = (rows % tile_rows != 0) or (n_split * kt != total_blocks)

        x2 = x[:n_prefix].reshape(rows, LANE)
        t2 = t[:n_prefix].reshape(rows, LANE)

        if n_split * kt == total_blocks:
            def in_map(s_, k_):
                return (s_ * kt + k_, 0)
        else:
            # Rectangular grid overshoots the real block count; clamp phantom
            # blocks onto the last real block (their compute is skipped).
            last = total_blocks - 1

            def in_map(s_, k_):
                return (jnp.minimum(s_ * kt + k_, last), 0)

        kernel = functools.partial(
            _dice_partial_kernel,
            rows_total=rows, kt=kt, tile_rows=tile_rows, chunk_rows=chunk_rows,
            whole_block=whole_block, need_masked_branch=need_masked_branch)

        part_shape = jax.ShapeDtypeStruct((n_split, 8, LANE), jnp.float32)
        part_spec = pl.BlockSpec((1, 8, LANE), lambda s_, k_: (s_, 0, 0))

        inter_p, psum_p, tsum_p = pl.pallas_call(
            kernel,
            out_shape=(part_shape, part_shape, part_shape),
            grid_spec=pltpu.PrefetchScalarGridSpec(
                num_scalar_prefetch=0,
                grid=(n_split, kt),
                in_specs=[
                    pl.BlockSpec((tile_rows, LANE), in_map),
                    pl.BlockSpec((tile_rows, LANE), in_map),
                ],
                out_specs=[part_spec, part_spec, part_spec],
            ),
            compiler_params=pltpu.CompilerParams(
                dimension_semantics=("parallel", "arbitrary"),
                vmem_limit_bytes=vmem_limit_bytes,
            ),
        )(x2, t2)

        inter = jnp.sum(inter_p) + tail[0]
        psum = jnp.sum(psum_p) + tail[1]
        tsum = jnp.sum(tsum_p) + tail[2]

    dice = (2.0 * inter + smooth) / (psum + tsum + smooth)
    return (1.0 - dice).astype(jnp.float32)


def dice_loss_ref(inputs, targets, smooth=1.0):
    """Plain-JAX reference matching the PyTorch module."""
    p = jax.nn.sigmoid(inputs.reshape(-1).astype(jnp.float32))
    t = targets.reshape(-1).astype(jnp.float32)
    mask = (t != IGNORE_LABEL).astype(jnp.float32)
    p = p * mask
    t = t * mask
    inter = jnp.sum(p * t)
    dice = (2.0 * inter + smooth) / (jnp.sum(p) + jnp.sum(t) + smooth)
    return 1.0 - dice


if __name__ == "__main__":
    key = jax.random.PRNGKey(0)

    def make_case(shape, k1, k2, k3, in_dtype=jnp.float32):
        inputs = jax.random.normal(k1, shape, dtype=jnp.float32).astype(in_dtype)
        targets = (jax.random.uniform(k2, shape) > 0.5).astype(jnp.float32)
        ignore = jax.random.uniform(k3, shape) > 0.9
        targets = jnp.where(ignore, jnp.float32(IGNORE_LABEL), targets)
        return inputs, targets

    # (shape, input dtype, kwargs): exercise the whole-block zero-copy path,
    # the whole-block + JAX-tail path, the chunked path with a masked partial
    # block + clamped phantom block + 2 splits, and the chunked fast path with
    # native-bf16 streaming.
    cases = [
        ((2, 4, 16, 16), jnp.float32, {}),
        ((2, 3, 15, 17), jnp.float32, {}),
        ((2, 4, 16, 20), jnp.float32, {"tile_rows": 8, "chunk_rows": 8, "n_split": 2}),
        ((2, 4, 16, 32), jnp.bfloat16, {"tile_rows": 16, "chunk_rows": 16}),
    ]
    keys = jax.random.split(key, 3 * len(cases)).reshape(len(cases), 3, 2)

    for ci, (shape, in_dtype, kwargs) in enumerate(cases):
        inputs, targets = make_case(shape, keys[ci, 0], keys[ci, 1], keys[ci, 2],
                                    in_dtype=in_dtype)
        loss = jax.block_until_ready(dice_loss(inputs, targets, smooth=1.0, **kwargs))
        ref = jax.block_until_ready(dice_loss_ref(inputs, targets, smooth=1.0))
        assert np.allclose(np.asarray(loss), np.asarray(ref), rtol=1e-5, atol=1e-5), (
            f"mismatch for shape {shape} ({in_dtype}): pallas={loss} ref={ref}"
        )

    print("KERNEL_OK")
</pallas_src>

<mosaic_0001>
module attributes {stable_mosaic.version = 11 : i64} {
  func.func @_dice_partial_kernel(%arg0: i32, %arg1: i32, %arg2: memref<16x128xf32, #tpu.memory_space<vmem>>, %arg3: memref<16x128xf32, #tpu.memory_space<vmem>>, %arg4: memref<1x8x128xf32, #tpu.memory_space<vmem>>, %arg5: memref<1x8x128xf32, #tpu.memory_space<vmem>>, %arg6: memref<1x8x128xf32, #tpu.memory_space<vmem>>) attributes {dimension_semantics = [#tpu.dimension_semantics<parallel>, #tpu.dimension_semantics<arbitrary>], iteration_bounds = array<i64: 1, 1>, scalar_prefetch = 0 : i64, scratch_operands = 0 : i64, tpu.core_type = #tpu.core_type<tc>, window_params = [{transform_indices = @transform_0, window_bounds = array<i64: 16, 128>}, {transform_indices = @transform_1, window_bounds = array<i64: 16, 128>}, {transform_indices = @transform_2, window_bounds = array<i64: 1, 8, 128>}, {transform_indices = @transform_3, window_bounds = array<i64: 1, 8, 128>}, {transform_indices = @transform_4, window_bounds = array<i64: 1, 8, 128>}]} {
    %c0_i32 = arith.constant 0 : i32
    %0 = arith.cmpi eq, %arg1, %c0_i32 : i32
    %1 = arith.extui %0 : i1 to i32
    %c0_i32_0 = arith.constant 0 : i32
    %2 = arith.cmpi ne, %1, %c0_i32_0 : i32
    scf.if %2 {
      %cst_28 = arith.constant 0.000000e+00 : f32
      %41 = vector.broadcast %cst_28 : f32 to vector<1x8x128xf32>
      %c0_29 = arith.constant 0 : index
      %c0_30 = arith.constant 0 : index
      %c0_31 = arith.constant 0 : index
      %42 = vector.load %arg4[%c0_29, %c0_30, %c0_31] : memref<1x8x128xf32, #tpu.memory_space<vmem>>, vector<1x8x128xf32>
      tpu.vector_store %arg4[%c0_29, %c0_30, %c0_31], %41 {strides = array<i32>} : memref<1x8x128xf32, #tpu.memory_space<vmem>>, vector<1x8x128xf32>,
      %cst_32 = arith.constant 0.000000e+00 : f32
      %43 = vector.broadcast %cst_32 : f32 to vector<1x8x128xf32>
      %c0_33 = arith.constant 0 : index
      %c0_34 = arith.constant 0 : index
      %c0_35 = arith.constant 0 : index
      %44 = vector.load %arg5[%c0_33, %c0_34, %c0_35] : memref<1x8x128xf32, #tpu.memory_space<vmem>>, vector<1x8x128xf32>
      tpu.vector_store %arg5[%c0_33, %c0_34, %c0_35], %43 {strides = array<i32>} : memref<1x8x128xf32, #tpu.memory_space<vmem>>, vector<1x8x128xf32>,
      %cst_36 = arith.constant 0.000000e+00 : f32
      %45 = vector.broadcast %cst_36 : f32 to vector<1x8x128xf32>
      %c0_37 = arith.constant 0 : index
      %c0_38 = arith.constant 0 : index
      %c0_39 = arith.constant 0 : index
      %46 = vector.load %arg6[%c0_37, %c0_38, %c0_39] : memref<1x8x128xf32, #tpu.memory_space<vmem>>, vector<1x8x128xf32>
      tpu.vector_store %arg6[%c0_37, %c0_38, %c0_39], %45 {strides = array<i32>} : memref<1x8x128xf32, #tpu.memory_space<vmem>>, vector<1x8x128xf32>,
    } else {
    }
    %c0 = arith.constant 0 : index
    %c0_1 = arith.constant 0 : index
    %3 = vector.load %arg2[%c0, %c0_1] : memref<16x128xf32, #tpu.memory_space<vmem>>, vector<16x128xf32>
    %c0_2 = arith.constant 0 : index
    %c0_3 = arith.constant 0 : index
    %4 = vector.load %arg3[%c0_2, %c0_3] : memref<16x128xf32, #tpu.memory_space<vmem>>, vector<16x128xf32>
    %cst = arith.constant 9.900000e+01 : f32
    %5 = vector.broadcast %cst : f32 to vector<16x128xf32>
    %6 = arith.cmpf one, %4, %5 : vector<16x128xf32>
    %7 = arith.negf %3 : vector<16x128xf32>
    %8 = math.exp %7 : vector<16x128xf32>
    %cst_4 = arith.constant 1.000000e+00 : f32
    %9 = vector.broadcast %cst_4 : f32 to vector<16x128xf32>
    %10 = arith.addf %9, %8 : vector<16x128xf32>
    %11 = arith.divf %9, %10 : vector<16x128xf32>
    %cst_5 = arith.constant 0.000000e+00 : f32
    %12 = vector.broadcast %cst_5 : f32 to vector<16x128xf32>
    %13 = arith.select %6, %11, %12 : vector<16x128xi1>, vector<16x128xf32>
    %cst_6 = arith.constant 0.000000e+00 : f32
    %14 = vector.broadcast %cst_6 : f32 to vector<16x128xf32>
    %15 = arith.select %6, %4, %14 : vector<16x128xi1>, vector<16x128xf32>
    %c0_7 = arith.constant 0 : index
    %c0_8 = arith.constant 0 : index
    %c0_9 = arith.constant 0 : index
    %16 = vector.load %arg4[%c0_7, %c0_8, %c0_9] : memref<1x8x128xf32, #tpu.memory_space<vmem>>, vector<1x1x128xf32>
    %17 = vector.shape_cast %16 : vector<1x1x128xf32> to vector<1x128xf32>
    %18 = arith.mulf %13, %15 : vector<16x128xf32>
    %cst_10 = arith.constant dense<0.000000e+00> : vector<128xf32>
    %19 = vector.multi_reduction <add>, %18, %cst_10 [0] : vector<16x128xf32> to vector<128xf32>
    %20 = vector.shape_cast %19 : vector<128xf32> to vector<1x128xf32>
    %21 = arith.addf %17, %20 : vector<1x128xf32>
    %c0_11 = arith.constant 0 : index
    %c0_12 = arith.constant 0 : index
    %c0_13 = arith.constant 0 : index
    %22 = vector.load %arg4[%c0_11, %c0_12, %c0_13] : memref<1x8x128xf32, #tpu.memory_space<vmem>>, vector<1x1x128xf32>
    %23 = vector.shape_cast %22 : vector<1x1x128xf32> to vector<1x128xf32>
    %24 = vector.shape_cast %21 : vector<1x128xf32> to vector<1x1x128xf32>
    tpu.vector_store %arg4[%c0_11, %c0_12, %c0_13], %24 {strides = array<i32>} : memref<1x8x128xf32, #tpu.memory_space<vmem>>, vector<1x1x128xf32>,
    %c0_14 = arith.constant 0 : index
    %c0_15 = arith.constant 0 : index
    %c0_16 = arith.constant 0 : index
    %25 = vector.load %arg5[%c0_14, %c0_15, %c0_16] : memref<1x8x128xf32, #tpu.memory_space<vmem>>, vector<1x1x128xf32>
    %26 = vector.shape_cast %25 : vector<1x1x128xf32> to vector<1x128xf32>
    %cst_17 = arith.constant dense<0.000000e+00> : vector<128xf32>
    %27 = vector.multi_reduction <add>, %13, %cst_17 [0] : vector<16x128xf32> to vector<128xf32>
    %28 = vector.shape_cast %27 : vector<128xf32> to vector<1x128xf32>
    %29 = arith.addf %26, %28 : vector<1x128xf32>
    %c0_18 = arith.constant 0 : index
    %c0_19 = arith.constant 0 : index
    %c0_20 = arith.constant 0 : index
    %30 = vector.load %arg5[%c0_18, %c0_19, %c0_20] : memref<1x8x128xf32, #tpu.memory_space<vmem>>, vector<1x1x128xf32>
    %31 = vector.shape_cast %30 : vector<1x1x128xf32> to vector<1x128xf32>
    %32 = vector.shape_cast %29 : vector<1x128xf32> to vector<1x1x128xf32>
    tpu.vector_store %arg5[%c0_18, %c0_19, %c0_20], %32 {strides = array<i32>} : memref<1x8x128xf32, #tpu.memory_space<vmem>>, vector<1x1x128xf32>,
    %c0_21 = arith.constant 0 : index
    %c0_22 = arith.constant 0 : index
    %c0_23 = arith.constant 0 : index
    %33 = vector.load %arg6[%c0_21, %c0_22, %c0_23] : memref<1x8x128xf32, #tpu.memory_space<vmem>>, vector<1x1x128xf32>
    %34 = vector.shape_cast %33 : vector<1x1x128xf32> to vector<1x128xf32>
    %cst_24 = arith.constant dense<0.000000e+00> : vector<128xf32>
    %35 = vector.multi_reduction <add>, %15, %cst_24 [0] : vector<16x128xf32> to vector<128xf32>
    %36 = vector.shape_cast %35 : vector<128xf32> to vector<1x128xf32>
    %37 = arith.addf %34, %36 : vector<1x128xf32>
    %c0_25 = arith.constant 0 : index
    %c0_26 = arith.constant 0 : index
    %c0_27 = arith.constant 0 : index
    %38 = vector.load %arg6[%c0_25, %c0_26, %c0_27] : memref<1x8x128xf32, #tpu.memory_space<vmem>>, vector<1x1x128xf32>
    %39 = vector.shape_cast %38 : vector<1x1x128xf32> to vector<1x128xf32>
    %40 = vector.shape_cast %37 : vector<1x128xf32> to vector<1x1x128xf32>
    tpu.vector_store %arg6[%c0_25, %c0_26, %c0_27], %40 {strides = array<i32>} : memref<1x8x128xf32, #tpu.memory_space<vmem>>, vector<1x1x128xf32>,
    return
  }
  func.func @transform_0(%arg0: i32, %arg1: i32) -> (i32, i32) {
    %c1_i32 = arith.constant 1 : i32
    %0 = arith.muli %arg0, %c1_i32 : i32
    %1 = arith.addi %0, %arg1 : i32
    %c0_i32 = arith.constant 0 : i32
    %c0_i32_0 = arith.constant 0 : i32
    return %1, %c0_i32 : i32, i32
  }
  func.func @transform_1(%arg0: i32, %arg1: i32) -> (i32, i32) {
    %c1_i32 = arith.constant 1 : i32
    %0 = arith.muli %arg0, %c1_i32 : i32
    %1 = arith.addi %0, %arg1 : i32
    %c0_i32 = arith.constant 0 : i32
    %c0_i32_0 = arith.constant 0 : i32
    return %1, %c0_i32 : i32, i32
  }
  func.func @transform_2(%arg0: i32, %arg1: i32) -> (i32, i32, i32) {
    %c0_i32 = arith.constant 0 : i32
    %c0_i32_0 = arith.constant 0 : i32
    %c0_i32_1 = arith.constant 0 : i32
    return %arg0, %c0_i32, %c0_i32_0 : i32, i32, i32
  }
  func.func @transform_3(%arg0: i32, %arg1: i32) -> (i32, i32, i32) {
    %c0_i32 = arith.constant 0 : i32
    %c0_i32_0 = arith.constant 0 : i32
    %c0_i32_1 = arith.constant 0 : i32
    return %arg0, %c0_i32, %c0_i32_0 : i32, i32, i32
  }
  func.func @transform_4(%arg0: i32, %arg1: i32) -> (i32, i32, i32) {
    %c0_i32 = arith.constant 0 : i32
    %c0_i32_0 = arith.constant 0 : i32
    %c0_i32_1 = arith.constant 0 : i32
    return %arg0, %c0_i32, %c0_i32_0 : i32, i32, i32
  }
}

</mosaic_0001>

<bundles_post_ra>
// kernel: tpu_custom_call.1
= control target key start
LH: loop header
LB: loop body
LE: loop exit
PB: predicated region body
PF: predicated region fallthrough
CT: control target
= control target key end

     0   :  { %10 = vsyncpa [#allocation3], 0  ;;  %s407_s0 = inlined_call_operand.hbm [shape: f32[16,128], index: 0, kind: input, shape index: {}]   ;;  %s408_s1 = inlined_call_operand.hbm [shape: f32[16,128], index: 1, kind: input, shape index: {}]   ;;  %s409_s2 = inlined_call_operand.hbm [shape: f32[1,8,128], index: 2, kind: output, shape index: {0}]   ;;  %s410_s3 = inlined_call_operand.hbm [shape: f32[1,8,128], index: 3, kind: output, shape index: {1}]   ;;  %s411_s4 = inlined_call_operand.hbm [shape: f32[1,8,128], index: 4, kind: output, shape index: {2}]  }
   0x1   :  { %11 = vsyncpa [#allocation6], 0 }
   0x2   :  { %12 = vsyncpa [#allocation4], 0 }
   0x3   :  { %13 = vsyncpa [#allocation9], 0  ;;  %s296_s15 = smov [#allocation2]   ;;  %s178_s19 = scalar_lea.hbm %s407_s0, 256 }
   0x4   :  { %s23_s16 = sshll.u32 %s296_s15, 4  ;;  %p179_p0 = scmp.ne.s32.totalorder %s407_s0, %s178_s19  ;;  %s24_s16 = int_to_ptr.vmem [resolvable:$true] %s23_s16 }
   0x5   :  { %p182_p1 = scmp.lt.u32.totalorder %s178_s19, %s407_s0 }
   0x7   :  { %p184_p2 = pnand %p182_p1, %p179_p0 }
   0x9   :  { %187 = shalt.err (!%p184_p2)
}
   0xa   :  { %s188_s24 = scalar_lea.vmem %s24_s16, 256  ;;  %p193_p4 = scmp.lt.s32.totalorder %s24_s16, %s24_s16 }
   0xb   :  { %p189_p3 = scmp.ne.s32.totalorder %s24_s16, %s188_s24  ;;  %p194_p5 = scmp.lt.s32.totalorder %s188_s24, %s188_s24 }
   0xd   :  { %p195_p6 = por %p194_p5, %p193_p4 }
   0xf   :  { %p196_p7 = pnand %p195_p6, %p189_p3 }
  0x11   :  { %199 = shalt.err (!%p196_p7)
}
  0x12   :  { %s297_s25 = smov 128   ;;  %s298_s26 = smov 8  }
  0x13   :  { %29 = dma.hbm_to_vmem [thread:$0]  %s407_s0, 256, %s24_s16, [#allocation3], %s297_s25, %s297_s25, %s298_s26  }
  0x14   :  { %s299_s29 = smov [#allocation5]   ;;  %s200_s7 = scalar_lea.hbm %s408_s1, 256 }
  0x15   :  { %s39_s30 = sshll.u32 %s299_s29, 4  ;;  %p201_p8 = scmp.ne.s32.totalorder %s408_s1, %s200_s7  ;;  %s40_s30 = int_to_ptr.vmem [resolvable:$true] %s39_s30 }
  0x16   :  { %p204_p9 = scmp.lt.u32.totalorder %s200_s7, %s408_s1 }
  0x18   :  { %p206_p10 = pnand %p204_p9, %p201_p8 }
  0x1a   :  { %209 = shalt.err (!%p206_p10)
}
  0x1b   :  { %s210_s12 = scalar_lea.vmem %s40_s30, 256  ;;  %p215_p12 = scmp.lt.s32.totalorder %s40_s30, %s40_s30 }
  0x1c   :  { %p211_p11 = scmp.ne.s32.totalorder %s40_s30, %s210_s12  ;;  %p216_p13 = scmp.lt.s32.totalorder %s210_s12, %s210_s12 }
  0x1e   :  { %p217_p0 = por %p216_p13, %p215_p12 }
  0x20   :  { %p218_p1 = pnand %p217_p0, %p211_p11 }
  0x22   :  { %221 = shalt.err (!%p218_p1)
}
  0x23   :  { %45 = dma.hbm_to_vmem [thread:$0]  %s408_s1, 256, %s40_s30, [#allocation6], %s297_s25, %s297_s25, %s298_s26  }
  0x24   :  { %288 = dma.done.wait [#allocation3], 256  }
  0x25   :  { %289 = vsyncadd [#allocation3], 4294967040 }
  0x26   :  { %290 = dma.done.wait [#allocation6], 256  }
  0x27   :  { %291 = vsyncadd [#allocation6], 4294967040  ;;  %v300_v0 = vmov 0.0   ;;  %v63_v1 = vld [vmem:[#allocation2] sm:$0xff]  ;;  %v64_v2 = vld [vmem:[#allocation2 + $0x8] sm:$0xff]  ;;  %s301_s1 = smov [#allocation8]  }
  0x28   :  { %61 = vst [vmem:[#allocation8] sm:$0xff] %v300_v0  ;;  %60 = vst [vmem:[#allocation7] sm:$0xff] %v300_v0  ;;  %v65_v3 = vld [vmem:[#allocation5] sm:$0xff]  ;;  %v66_v4 = vld [vmem:[#allocation5 + $0x8] sm:$0xff]  ;;  %v160_v5 = vmul.f32 -1.442695, %v63_v1 }
  0x29   :  { %62 = vst [vmem:[#allocation10] sm:$0xff] %v300_v0  ;;  %vm67_vm0 = vcmp.ne.f32.partialorder %v65_v3, 99.0  ;;  %v161_v6 = vmul.f32 -1.442695, %v64_v2  ;;  %vm68_vm1 = vcmp.ne.f32.partialorder %v66_v4, 99.0  ;;  %s133_s14 = sshll.u32 %s301_s1, 4  ;;  %s134_s14 = int_to_ptr.vmem [resolvable:$true] %s133_s14 }
  0x2a   :  { %170 = vpow2.f32 %v160_v5  ;;  %v83_v7 = vsel %vm67_vm0, %v65_v3, 0.0  ;;  %v84_v8 = vsel %vm68_vm1, %v66_v4, 0.0  ;;  %s302_s15 = smov [#allocation10]   ;;  %s303_s17 = smov [#allocation7]  }
  0x2b   :  { %172 = vpow2.f32 %v161_v6  ;;  %v108_v9 = vadd.f32 %v84_v8, %v83_v7  ;;  %s143_s16 = sshll.u32 %s302_s15, 4  ;;  %s123_s18 = sshll.u32 %s303_s17, 4  ;;  %s357_s16 = int_to_ptr.vmem [resolvable:$true] %s143_s16  ;;  %s359_s18 = int_to_ptr.vmem [resolvable:$true] %s123_s18 }
  0x2c   :  { %s222_s19 = scalar_lea.vmem %s134_s14, 128  ;;  %p227_p3 = scmp.lt.s32.totalorder %s134_s14, %s134_s14 }
  0x2d   :  { %v109_v10 = vrot.slane %v108_v9, 4  ;;  %p223_p2 = scmp.ne.s32.totalorder %s134_s14, %s222_s19  ;;  %p228_p4 = scmp.lt.s32.totalorder %s222_s19, %s222_s19 }
  0x2f   :  { %v110_v11 = vadd.f32 %v109_v10, %v108_v9  ;;  %v97_v39 = vld [vmem:[#allocation8] sm:$0x1]  ;;  %v85_v42 = vld [vmem:[#allocation7] sm:$0x1]  ;;  %p229_p5 = por %p228_p4, %p227_p3 }
  0x30   :  { %v107_v19 = vld [vmem:[#allocation10] sm:$0x1] }
  0x31   :  { %v111_v12 = vrot.slane %v110_v11, 2  ;;  %p230_p6 = pnand %p229_p5, %p223_p2 }
  0x33   :  { %v112_v13 = vadd.f32 %v111_v12, %v110_v11 }
  0x34   :  { %v171_v14 = vpop.eup %170 }
  0x35   :  { %v173_v15 = vpop.eup %172  ;;  %v75_v16 = vadd.f32 1.0, %v171_v14  ;;  %v113_v17 = vrot.slane %v112_v13, 1 }
  0x36   :  { %v76_v18 = vadd.f32 1.0, %v173_v15 }
  0x37   :  { %174 = vrcp.f32 %v75_v16  ;;  %v114_v20 = vadd.f32 %v113_v17, %v112_v13 }
  0x38   :  { %176 = vrcp.f32 %v76_v18 }
  0x39   :  { %v115_v21 = vadd.f32 %v114_v20, %v107_v19 }
  0x3b   :  { %116 = vst [vmem:[#allocation10] sm:$0x1] %v115_v21 }
  0x41   :  { %v175_v22 = vpop.eup %174 }
  0x42   :  { %v177_v23 = vpop.eup %176  ;;  %v81_v24 = vsel %vm67_vm0, %v175_v22, 0.0 }
  0x43   :  { %v82_v25 = vsel %vm68_vm1, %v177_v23, 0.0  ;;  %v86_v26 = vmul.f32 %v83_v7, %v81_v24 }
  0x44   :  { %v98_v27 = vadd.f32 %v82_v25, %v81_v24  ;;  %v87_v28 = vmul.f32 %v84_v8, %v82_v25 }
  0x46   :  { %v99_v29 = vrot.slane %v98_v27, 4  ;;  %v88_v30 = vadd.f32 %v87_v28, %v86_v26 }
  0x48   :  { %v100_v31 = vadd.f32 %v99_v29, %v98_v27  ;;  %v89_v32 = vrot.slane %v88_v30, 4 }
  0x4a   :  { %v101_v33 = vrot.slane %v100_v31, 2  ;;  %v90_v34 = vadd.f32 %v89_v32, %v88_v30 }
  0x4c   :  { %v102_v35 = vadd.f32 %v101_v33, %v100_v31  ;;  %v91_v36 = vrot.slane %v90_v34, 2 }
  0x4e   :  { %v103_v37 = vrot.slane %v102_v35, 1  ;;  %v92_v38 = vadd.f32 %v91_v36, %v90_v34 }
  0x50   :  { %v104_v40 = vadd.f32 %v103_v37, %v102_v35  ;;  %v93_v41 = vrot.slane %v92_v38, 1 }
  0x52   :  { %v105_v43 = vadd.f32 %v104_v40, %v97_v39  ;;  %v94_v44 = vadd.f32 %v93_v41, %v92_v38 }
  0x54   :  { %106 = vst [vmem:[#allocation8] sm:$0x1] %v105_v43  ;;  %v95_v45 = vadd.f32 %v94_v44, %v85_v42 }
  0x55   :  { %233 = shalt.err (!%p230_p6)
}
  0x56   :  { %s234_s22 = scalar_lea.hbm %s410_s3, 128 }
  0x57   :  { %p235_p7 = scmp.ne.s32.totalorder %s410_s3, %s234_s22  ;;  %p238_p8 = scmp.lt.u32.totalorder %s234_s22, %s410_s3 }
  0x59   :  { %p240_p9 = pnand %p238_p8, %p235_p7 }
  0x5b   :  { %243 = shalt.err (!%p240_p9)
}
  0x5c   :  { %136 = dma.vmem_to_hbm [thread:$0]  %s134_s14, 128, %s410_s3, [#allocation9]   ;;  %96 = vst [vmem:[#allocation7] sm:$0x1] %v95_v45 }
  0x5d   :  { %s244_s29 = scalar_lea.vmem %s357_s16, 128  ;;  %p249_p11 = scmp.lt.s32.totalorder %s357_s16, %s357_s16 }
  0x5e   :  { %p245_p10 = scmp.ne.s32.totalorder %s357_s16, %s244_s29  ;;  %p250_p12 = scmp.lt.s32.totalorder %s244_s29, %s244_s29 }
  0x60   :  { %p251_p13 = por %p250_p12, %p249_p11 }
  0x62   :  { %p252_p0 = pnand %p251_p13, %p245_p10 }
  0x64   :  { %255 = shalt.err (!%p252_p0)
}
  0x65   :  { %s256_s6 = scalar_lea.hbm %s411_s4, 128 }
  0x66   :  { %p257_p1 = scmp.ne.s32.totalorder %s411_s4, %s256_s6  ;;  %p260_p2 = scmp.lt.u32.totalorder %s256_s6, %s411_s4 }
  0x68   :  { %p262_p3 = pnand %p260_p2, %p257_p1 }
  0x6a   :  { %265 = shalt.err (!%p262_p3)
}
  0x6b   :  { %146 = dma.vmem_to_hbm [thread:$0]  %s357_s16, 128, %s411_s4, [#allocation9]  }
  0x6c   :  { %s266_s12 = scalar_lea.vmem %s359_s18, 128  ;;  %p271_p5 = scmp.lt.s32.totalorder %s359_s18, %s359_s18 }
  0x6d   :  { %p267_p4 = scmp.ne.s32.totalorder %s359_s18, %s266_s12  ;;  %p272_p6 = scmp.lt.s32.totalorder %s266_s12, %s266_s12 }
  0x6f   :  { %p273_p7 = por %p272_p6, %p271_p5 }
  0x71   :  { %p274_p8 = pnand %p273_p7, %p267_p4 }
  0x73   :  { %277 = shalt.err (!%p274_p8)
}
  0x74   :  { %s278_s1 = scalar_lea.hbm %s409_s2, 128 }
  0x75   :  { %p279_p9 = scmp.ne.s32.totalorder %s409_s2, %s278_s1  ;;  %p282_p10 = scmp.lt.u32.totalorder %s278_s1, %s409_s2 }
  0x77   :  { %p284_p11 = pnand %p282_p10, %p279_p9 }
  0x79   :  { %287 = shalt.err (!%p284_p11)
}
  0x7a   :  { %126 = dma.vmem_to_hbm [thread:$0]  %s359_s18, 128, %s409_s2, [#allocation4]  }
  0x7b   :  { %292 = dma.done.wait [#allocation4], 128  }
  0x7c   :  { %293 = vsyncadd [#allocation4], 4294967168 }
  0x7d   :  { %294 = dma.done.wait [#allocation9], 256  }
  0x7e   :  { %295 = vsyncadd [#allocation9], 4294967040 }
  0x7f   :  { %156 = vsyncpa [#allocation3], 1 }
  0x80   :  { %157 = vsyncpa [#allocation6], 1 }
  0x81   :  { %158 = vsyncpa [#allocation4], 1 }
  0x82   :  { %159 = vsyncpa [#allocation9], 1 }

</bundles_post_ra>
